<compile_context>
chip_gen: v5e
topology: v5e:2x2
jax: 0.10.0
libtpu: 0.0.40
codegen_flags: <defaults>
</compile_context>

<pallas_src>
import functools

import jax
import jax.numpy as jnp
from jax.experimental import pallas as pl
from jax.experimental.pallas import tpu as pltpu

IN_FEATURES = 784
OUT_FEATURES = 10
N_PAD = 128          # lane-dense padded width used only inside the kernel / for W^T


def _round_up(x: int, m: int) -> int:
    return ((x + m - 1) // m) * m


def linear_kernel(x_ref, w_ref, b_ref, o_ref):
    # x_ref: [TILE_B, 784] bf16   w_ref: [784, 128] bf16
    # b_ref: [1, 128] f32         o_ref: [TILE_B, 10] f32
    acc = jnp.dot(x_ref[...], w_ref[...], preferred_element_type=jnp.float32)
    # Bias add in f32 on the 128-wide accumulator, then slice to the real 10
    # output features for a narrow (but tiny) store -- hidden under the x DMA.
    o_ref[...] = (acc + b_ref[...])[:, :OUT_FEATURES]


@functools.partial(jax.jit, static_argnames=("tile_b",))
def mnist_logistic_linear(x, w, b, *, tile_b: int = 2048):
    """Forward pass of nn.Linear(784, 10).

    x: [B, 784] f32, w: [10, 784] f32 (PyTorch layout), b: [10] f32.
    Returns [B, 10] f32.
    """
    B = x.shape[0]

    # --- input prep: W^T padded to 128 lanes, x/W cast to bf16, bias kept f32 ---
    w_t = jnp.zeros((IN_FEATURES, N_PAD), dtype=jnp.float32)
    w_t = w_t.at[:, :OUT_FEATURES].set(w.T).astype(jnp.bfloat16)
    b_pad = jnp.zeros((1, N_PAD), dtype=jnp.float32)
    b_pad = b_pad.at[0, :OUT_FEATURES].set(b)
    x_bf = x.astype(jnp.bfloat16)

    # --- tile selection (no batch padding; ragged last block is masked) ---
    #  (a) don't over-tile tiny batches,
    #  (b) keep >= 2 grid steps when possible so the "parallel" axis shards
    #      across the two TensorCores on v7x.
    tile_b = max(8, min(tile_b, _round_up(pl.cdiv(B, 2), 8)))
    grid = (pl.cdiv(B, tile_b),)

    cost = pl.CostEstimate(
        flops=2 * B * IN_FEATURES * N_PAD,
        transcendentals=0,
        bytes_accessed=(B * IN_FEATURES * 2            # read x (bf16)
                        + IN_FEATURES * N_PAD * 2      # read W^T once (bf16)
                        + B * OUT_FEATURES * 4),       # write out (f32, unpadded)
    )

    out = pl.pallas_call(
        linear_kernel,
        out_shape=jax.ShapeDtypeStruct((B, OUT_FEATURES), jnp.float32),
        grid=grid,
        in_specs=[
            # x: streamed batch tiles (double-buffered by the pipeline)
            pl.BlockSpec((tile_b, IN_FEATURES), lambda i: (i, 0)),
            # W^T: same block every step -> stays resident in VMEM
            pl.BlockSpec((IN_FEATURES, N_PAD), lambda i: (0, 0)),
            # bias: same block every step -> stays resident in VMEM
            pl.BlockSpec((1, N_PAD), lambda i: (0, 0)),
        ],
        out_specs=pl.BlockSpec((tile_b, OUT_FEATURES), lambda i: (i, 0)),
        compiler_params=pltpu.CompilerParams(
            dimension_semantics=("parallel",),
            vmem_limit_bytes=32 << 20,
        ),
        cost_estimate=cost,
    )(x_bf, w_t, b_pad)

    return out


if __name__ == "__main__":
    key = jax.random.PRNGKey(0)
    k_x, k_w, k_b = jax.random.split(key, 3)

    # Small batch of flattened 28x28 "images".
    B = 8
    x = jax.random.normal(k_x, (B, IN_FEATURES), dtype=jnp.float32)

    # Deterministic parameter init mimicking nn.Linear default:
    # U(-1/sqrt(in_features), 1/sqrt(in_features)).
    bound = 1.0 / (IN_FEATURES ** 0.5)
    w = jax.random.uniform(
        k_w, (OUT_FEATURES, IN_FEATURES), dtype=jnp.float32,
        minval=-bound, maxval=bound)          # PyTorch layout [out, in]
    b = jax.random.uniform(
        k_b, (OUT_FEATURES,), dtype=jnp.float32, minval=-bound, maxval=bound)

    out = mnist_logistic_linear(x, w, b)
    out = jax.block_until_ready(out)

    # Reference with the same bf16 input rounding (kernel accumulates in f32).
    x_bf = x.astype(jnp.bfloat16).astype(jnp.float32)
    w_bf = w.astype(jnp.bfloat16).astype(jnp.float32)
    ref_bf = x_bf @ w_bf.T + b
    ref_f32 = x @ w.T + b

    assert out.shape == (B, OUT_FEATURES)
    assert jnp.allclose(out, ref_bf, atol=1e-3, rtol=1e-3), "mismatch vs bf16 reference"
    assert jnp.allclose(out, ref_f32, atol=5e-2, rtol=5e-2), "mismatch vs f32 reference"

    print("KERNEL_OK")
</pallas_src>

<mosaic_0001>
module attributes {stable_mosaic.version = 11 : i64} {
  func.func @linear_kernel(%arg0: i32, %arg1: memref<8x784xbf16, #tpu.memory_space<vmem>>, %arg2: memref<784x128xbf16, #tpu.memory_space<vmem>>, %arg3: memref<1x128xf32, #tpu.memory_space<vmem>>, %arg4: memref<8x10xf32, #tpu.memory_space<vmem>>) attributes {dimension_semantics = [#tpu.dimension_semantics<parallel>], iteration_bounds = array<i64: 1>, scalar_prefetch = 0 : i64, scratch_operands = 0 : i64, tpu.core_type = #tpu.core_type<tc>, window_params = [{transform_indices = @transform_0, window_bounds = array<i64: 8, 784>}, {pipeline_mode = #tpu.pipeline_mode<synchronous>, transform_indices = @transform_1, window_bounds = array<i64: 784, 128>}, {pipeline_mode = #tpu.pipeline_mode<synchronous>, transform_indices = @transform_2, window_bounds = array<i64: 1, 128>}, {transform_indices = @transform_3, window_bounds = array<i64: 8, 10>}]} {
    %c0 = arith.constant 0 : index
    %c0_0 = arith.constant 0 : index
    %0 = vector.load %arg1[%c0, %c0_0] : memref<8x784xbf16, #tpu.memory_space<vmem>>, vector<8x784xbf16>
    %c0_1 = arith.constant 0 : index
    %c0_2 = arith.constant 0 : index
    %1 = vector.load %arg2[%c0_1, %c0_2] : memref<784x128xbf16, #tpu.memory_space<vmem>>, vector<784x128xbf16>
    %cst = arith.constant dense<0.000000e+00> : vector<8x128xf32>
    %2 = tpu.matmul %0, %1, %cst {dimension_numbers = #tpu.dot_dimension_numbers<[1], [0], [0], [1], [0, 0, 1, 1], [], []>} : vector<8x784xbf16>, vector<784x128xbf16>, vector<8x128xf32> -> vector<8x128xf32>
    %c0_3 = arith.constant 0 : index
    %c0_4 = arith.constant 0 : index
    %3 = vector.load %arg3[%c0_3, %c0_4] : memref<1x128xf32, #tpu.memory_space<vmem>>, vector<1x128xf32>
    %4 = vector.broadcast %3 : vector<1x128xf32> to vector<8x128xf32>
    %5 = arith.addf %2, %4 : vector<8x128xf32>
    %6 = vector.extract_strided_slice %5 {offsets = [0, 0], sizes = [8, 10], strides = [1, 1]} : vector<8x128xf32> to vector<8x10xf32>
    %c0_5 = arith.constant 0 : index
    %c0_6 = arith.constant 0 : index
    %7 = vector.load %arg4[%c0_5, %c0_6] : memref<8x10xf32, #tpu.memory_space<vmem>>, vector<8x10xf32>
    tpu.vector_store %arg4[%c0_5, %c0_6], %6 {strides = array<i32>} : memref<8x10xf32, #tpu.memory_space<vmem>>, vector<8x10xf32>,
    return
  }
  func.func @transform_0(%arg0: i32) -> (i32, i32) {
    %c0_i32 = arith.constant 0 : i32
    %c0_i32_0 = arith.constant 0 : i32
    return %arg0, %c0_i32 : i32, i32
  }
  func.func @transform_1(%arg0: i32) -> (i32, i32) {
    %c0_i32 = arith.constant 0 : i32
    %c0_i32_0 = arith.constant 0 : i32
    %c0_i32_1 = arith.constant 0 : i32
    return %c0_i32, %c0_i32_0 : i32, i32
  }
  func.func @transform_2(%arg0: i32) -> (i32, i32) {
    %c0_i32 = arith.constant 0 : i32
    %c0_i32_0 = arith.constant 0 : i32
    %c0_i32_1 = arith.constant 0 : i32
    return %c0_i32, %c0_i32_0 : i32, i32
  }
  func.func @transform_3(%arg0: i32) -> (i32, i32) {
    %c0_i32 = arith.constant 0 : i32
    %c0_i32_0 = arith.constant 0 : i32
    return %arg0, %c0_i32 : i32, i32
  }
}

</mosaic_0001>

<bundles_post_ra>
// kernel: mnist_logistic_linear.1
= control target key start
LH: loop header
LB: loop body
LE: loop exit
PB: predicated region body
PF: predicated region fallthrough
CT: control target
= control target key end

     0   :  { %s1013_s0 = inlined_call_operand.vmem [shape: bf16[8,784], index: 0, kind: input, shape index: {}]   ;;  %s1014_s1 = inlined_call_operand.vmem [shape: bf16[784,128], index: 1, kind: input, shape index: {}]   ;;  %s1015_s2 = inlined_call_operand.vmem [shape: f32[1,128], index: 2, kind: input, shape index: {}]   ;;  %s1016_s3 = inlined_call_operand.hbm [shape: f32[8,10], index: 3, kind: output, shape index: {}]  }
   0x1   :  { %v757_v0 = vld [vmem:[%s1014_s1 + $0x38] sm:$0xff]  ;;  %v756_v3 = vld [vmem:[%s1014_s1 + $0x30] sm:$0xff]  ;;  %v755_v8 = vld [vmem:[%s1014_s1 + $0x28] sm:$0xff] }
   0x2   :  { %v765_v1 = vld [vmem:[%s1014_s1 + $0x78] sm:$0xff]  ;;  %444 = vmatpush.bf16.msra.mxu0 %v757_v0  ;;  %v764_v4 = vld [vmem:[%s1014_s1 + $0x70] sm:$0xff]  ;;  %v763_v9 = vld [vmem:[%s1014_s1 + $0x68] sm:$0xff] }
   0x3   :  { %v773_v2 = vld [vmem:[%s1014_s1 + $0xb8] sm:$0xff]  ;;  %457 = vmatpush.bf16.msra.mxu1 %v765_v1  ;;  %v772_v5 = vld [vmem:[%s1014_s1 + $0xb0] sm:$0xff]  ;;  %v771_v10 = vld [vmem:[%s1014_s1 + $0xa8] sm:$0xff] }
   0x4   :  { %470 = vmatpush.bf16.msra.mxu2 %v773_v2  ;;  %v781_v6 = vld [vmem:[%s1014_s1 + $0xf8] sm:$0xff]  ;;  %v780_v7 = vld [vmem:[%s1014_s1 + $0xf0] sm:$0xff]  ;;  %v779_v11 = vld [vmem:[%s1014_s1 + $0xe8] sm:$0xff] }
   0x5   :  { %483 = vmatpush.bf16.msra.mxu3 %v781_v6  ;;  %v754_v12 = vld [vmem:[%s1014_s1 + $0x20] sm:$0xff]  ;;  %v753_v16 = vld [vmem:[%s1014_s1 + $0x18] sm:$0xff] }
   0x6   :  { %445 = vmatpush.bf16.msra.mxu0 %v756_v3  ;;  %v762_v13 = vld [vmem:[%s1014_s1 + $0x60] sm:$0xff]  ;;  %v761_v17 = vld [vmem:[%s1014_s1 + $0x58] sm:$0xff] }
   0x7   :  { %458 = vmatpush.bf16.msra.mxu1 %v764_v4  ;;  %v770_v14 = vld [vmem:[%s1014_s1 + $0xa0] sm:$0xff]  ;;  %v769_v18 = vld [vmem:[%s1014_s1 + $0x98] sm:$0xff] }
   0x8   :  { %471 = vmatpush.bf16.msra.mxu2 %v772_v5  ;;  %v778_v15 = vld [vmem:[%s1014_s1 + $0xe0] sm:$0xff] }
   0x9   :  { %484 = vmatpush.bf16.msra.mxu3 %v780_v7 }
   0xa   :  { %446 = vmatpush.bf16.msra.mxu0 %v755_v8 }
   0xb   :  { %459 = vmatpush.bf16.msra.mxu1 %v763_v9 }
   0xc   :  { %472 = vmatpush.bf16.msra.mxu2 %v771_v10 }
   0xd   :  { %485 = vmatpush.bf16.msra.mxu3 %v779_v11 }
   0xe   :  { %447 = vmatpush.bf16.msra.mxu0 %v754_v12 }
   0xf   :  { %460 = vmatpush.bf16.msra.mxu1 %v762_v13 }
  0x10   :  { %473 = vmatpush.bf16.msra.mxu2 %v770_v14 }
  0x11   :  { %8 = vsyncpa [#allocation3], 0  ;;  %486 = vmatpush.bf16.msra.mxu3 %v778_v15  ;;  %v777_v19 = vld [vmem:[%s1014_s1 + $0xd8] sm:$0xff]  ;;  %v752_v20 = vld [vmem:[%s1014_s1 + $0x10] sm:$0xff]  ;;  %vm440_vm0 = vcmask 130048   ;;  %s544_s14 = sshll.u32 %s1016_s3, 4  ;;  %s545_s14 = int_to_ptr.hbm [resolvable:$true] %s544_s14 }
  0x12   :  { %448 = vmatpush.bf16.msra.mxu0 %v753_v16  ;;  %v760_v21 = vld [vmem:[%s1014_s1 + $0x50] sm:$0xff]  ;;  %v751_v24 = vld [vmem:[%s1014_s1 + $0x8] sm:$0xff]  ;;  %v16_v26 = vld [vmem:[%s1013_s0] sm:$0xff]  ;;  %vm535_vm1 = vcmask 80896  }
  0x13   :  { %461 = vmatpush.bf16.msra.mxu1 %v761_v17  ;;  %v768_v22 = vld [vmem:[%s1014_s1 + $0x90] sm:$0xff]  ;;  %v759_v25 = vld [vmem:[%s1014_s1 + $0x48] sm:$0xff]  ;;  %v126_v30 = vunpack.c.l.b16 %v16_v26  ;;  %v127_v31 = vunpack.c.h.b16 %v16_v26  ;;  %v750_v32 = vld [vmem:[%s1014_s1] sm:$0xff] }
  0x14   :  { %474 = vmatpush.bf16.msra.mxu2 %v769_v18  ;;  %v776_v23 = vld [vmem:[%s1014_s1 + $0xd0] sm:$0xff]  ;;  %v767_v27 = vld [vmem:[%s1014_s1 + $0x88] sm:$0xff]  ;;  %v758_v33 = vld [vmem:[%s1014_s1 + $0x40] sm:$0xff] }
  0x15   :  { %487 = vmatpush.bf16.msra.mxu3 %v777_v19  ;;  %v17_v28 = vld [vmem:[%s1013_s0 + $0x8] sm:$0xff]  ;;  %v766_v35 = vld [vmem:[%s1014_s1 + $0x80] sm:$0xff]  ;;  %v789_v36 = vld [vmem:[%s1014_s1 + $0x138] sm:$0xff]  ;;  %v133_v39 = vpack.c.b16 %v126_v30, %v126_v30  ;;  %v134_v40 = vpack.c.b16 %v127_v31, %v127_v31 }
  0x16   :  { %449 = vmatpush.bf16.msra.mxu0 %v752_v20  ;;  %v775_v29 = vld [vmem:[%s1014_s1 + $0xc8] sm:$0xff]  ;;  %v128_v34 = vunpack.c.l.b16 %v17_v28  ;;  %v797_v37 = vld [vmem:[%s1014_s1 + $0x178] sm:$0xff]  ;;  %v798_v38 = vld [vmem:[%s1014_s1 + $0x180] sm:$0xff]  ;;  %v129_v41 = vunpack.c.h.b16 %v17_v28 }
  0x17   :  { %462 = vmatpush.bf16.msra.mxu1 %v760_v21  ;;  %v774_v43 = vld [vmem:[%s1014_s1 + $0xc0] sm:$0xff]  ;;  %v788_v44 = vld [vmem:[%s1014_s1 + $0x130] sm:$0xff]  ;;  %v787_v47 = vld [vmem:[%s1014_s1 + $0x128] sm:$0xff] }
  0x18   :  { %475 = vmatpush.bf16.msra.mxu2 %v768_v22  ;;  %v135_v42 = vpack.c.b16 %v128_v34, %v128_v34  ;;  %v796_v45 = vld [vmem:[%s1014_s1 + $0x170] sm:$0xff]  ;;  %v136_v46 = vpack.c.b16 %v129_v41, %v129_v41  ;;  %v795_v48 = vld [vmem:[%s1014_s1 + $0x168] sm:$0xff]  ;;  %v786_v49 = vld [vmem:[%s1014_s1 + $0x120] sm:$0xff] }
  0x19   :  { %488 = vmatpush.bf16.msra.mxu3 %v776_v23  ;;  %v19_v50 = vld [vmem:[%s1013_s0 + $0x18] sm:$0xf]  ;;  %v794_v51 = vld [vmem:[%s1014_s1 + $0x160] sm:$0xff]  ;;  %v784_v56 = vld [vmem:[%s1014_s1 + $0x110] sm:$0xff] }
  0x1a   :  { %450 = vmatpush.bf16.msra.mxu0 %v751_v24  ;;  %v132_v52 = vunpack.c.l.b16 %v19_v50  ;;  %v785_v53 = vld [vmem:[%s1014_s1 + $0x118] sm:$0xff]  ;;  %v792_v57 = vld [vmem:[%s1014_s1 + $0x150] sm:$0xff]  ;;  %v783_v58 = vld [vmem:[%s1014_s1 + $0x108] sm:$0xff] }
  0x1b   :  { %463 = vmatpush.bf16.msra.mxu1 %v759_v25  ;;  %v793_v54 = vld [vmem:[%s1014_s1 + $0x158] sm:$0xff]  ;;  %v18_v59 = vld [vmem:[%s1013_s0 + $0x10] sm:$0xff]  ;;  %v791_v60 = vld [vmem:[%s1014_s1 + $0x148] sm:$0xff] }
  0x1c   :  { %476 = vmatpush.bf16.msra.mxu2 %v767_v27  ;;  %v139_v55 = vpack.c.b16 %v132_v52, %v132_v52  ;;  %v130_v61 = vunpack.c.l.b16 %v18_v59  ;;  %v782_v62 = vld [vmem:[%s1014_s1 + $0x100] sm:$0xff]  ;;  %v131_v63 = vunpack.c.h.b16 %v18_v59 }
  0x1d   :  { %489 = vmatpush.bf16.msra.mxu3 %v775_v29  ;;  %v790_v0 = vld [vmem:[%s1014_s1 + $0x140] sm:$0xff]  ;;  %s827_s1 = smov [#allocation2]  }
  0x1e   :  { %451 = vmatpush.bf16.msra.mxu0 %v750_v32  ;;  %v137_v1 = vpack.c.b16 %v130_v61, %v130_v61  ;;  %v138_v2 = vpack.c.b16 %v131_v63, %v131_v63  ;;  %v800_v9 = vld [vmem:[%s1015_s2] ss:$0 sm:$0xff]  ;;  %s542_s11 = sshll.u32 %s827_s1, 4  ;;  %s543_s11 = int_to_ptr.vmem [resolvable:$true] %s542_s11 }
  0x1f   :  { %464 = vmatpush.bf16.msra.mxu1 %v758_v33 }
  0x20   :  { %477 = vmatpush.bf16.msra.mxu2 %v766_v35 }
  0x21   :  { %452 = vmatmul.bf16.vlgmr.msra.gmra.mxu0 %v133_v39  ;;  %490 = vmatpush.bf16.msra.mxu3 %v774_v43 }
  0x22   :  { %496 = vmatpush.bf16.msrb.mxu0 %v789_v36  ;;  %465 = vmatmul.bf16.vlgmr.msra.gmra.mxu1 %v134_v40 }
  0x23   :  { %509 = vmatpush.bf16.msrb.mxu1 %v797_v37  ;;  %478 = vmatmul.bf16.vlgmr.msra.gmra.mxu2 %v135_v42 }
  0x24   :  { %529 = vmatpush.bf16.msrb.mxu2 %v798_v38  ;;  %491 = vmatmul.bf16.vlgmr.msra.gmra.mxu3 %v136_v46 }
  0x26   :  { %497 = vmatpush.bf16.msrb.mxu0 %v788_v44 }
  0x27   :  { %510 = vmatpush.bf16.msrb.mxu1 %v796_v45 }
  0x2a   :  { %498 = vmatpush.bf16.msrb.mxu0 %v787_v47 }
  0x2b   :  { %511 = vmatpush.bf16.msrb.mxu1 %v795_v48 }
  0x2e   :  { %499 = vmatpush.bf16.msrb.mxu0 %v786_v49 }
  0x2f   :  { %512 = vmatpush.bf16.msrb.mxu1 %v794_v51 }
  0x32   :  { %500 = vmatpush.bf16.msrb.mxu0 %v785_v53 }
  0x33   :  { %513 = vmatpush.bf16.msrb.mxu1 %v793_v54  ;;  %749 = vmatmul.msk.bf16.vlgmr.msrb.gmra.mxu2 %vm440_vm0, %v139_v55 }
  0x36   :  { %501 = vmatpush.bf16.msrb.mxu0 %v784_v56 }
  0x37   :  { %514 = vmatpush.bf16.msrb.mxu1 %v792_v57 }
  0x3a   :  { %502 = vmatpush.bf16.msrb.mxu0 %v783_v58 }
  0x3b   :  { %515 = vmatpush.bf16.msrb.mxu1 %v791_v60 }
  0x3e   :  { %503 = vmatpush.bf16.msrb.mxu0 %v782_v62 }
  0x3f   :  { %516 = vmatpush.bf16.msrb.mxu1 %v790_v0 }
  0x41   :  { %504 = vmatmul.bf16.vlgmr.msrb.gmra.mxu0 %v137_v1 }
  0x42   :  { %517 = vmatmul.bf16.vlgmr.msrb.gmra.mxu1 %v138_v2 }
  0x9e   :  { %v453_v3 = vpop.f32.mrf.mxu0 }
  0x9f   :  { %v466_v4 = vpop.f32.mrf.mxu1  ;;  %v454_v11 = vadd.f32 %v800_v9, %v453_v3 }
  0xa1   :  { %v467_v13 = vadd.f32 %v466_v4, %v454_v11 }
  0xa6   :  { %v479_v5 = vpop.f32.mrf.mxu2  ;;  %v455_v6 = vpop.f32.mrf.mxu0 }
  0xa7   :  { %v468_v7 = vpop.f32.mrf.mxu1  ;;  %v492_v8 = vpop.f32.mrf.mxu3  ;;  %v480_v15 = vadd.f32 %v479_v5, %v467_v13 }
  0xa9   :  { %v493_v16 = vadd.f32 %v492_v8, %v480_v15 }
  0xae   :  { %v481_v10 = vpop.f32.mrf.mxu2 }
  0xaf   :  { %v494_v12 = vpop.f32.mrf.mxu3 }
  0xb6   :  { %v531_v14 = vpop.f32.mrf.mxu2 }
  0xbe   :  { %v505_v17 = vpop.f32.mrf.mxu0  ;;  %v533_v20 = vpop.f32.mrf.mxu2 }
  0xbf   :  { %v506_v18 = vadd.f32 %v505_v17, %v493_v16  ;;  %v518_v19 = vpop.f32.mrf.mxu1 }
  0xc1   :  { %v519_v21 = vadd.f32 %v518_v19, %v506_v18 }
  0xc3   :  { %v532_v22 = vadd.f32 %v531_v14, %v519_v21 }
  0xc5   :  { %536 = vst.msk [vmem:[#allocation2] sm:$0xff] %vm535_vm1, %v532_v22 }
  0xc6   :  { %v507_v23 = vpop.f32.mrf.mxu0  ;;  %547 = dma.vmem_to_hbm [thread:$0]  %s543_s11, 128, %s545_s14, [#allocation3]  }
  0xc7   :  { %v520_v24 = vpop.f32.mrf.mxu1 }
  0xc8   :  { %825 = dma.done.wait [#allocation3], 128  }
  0xc9   :  { %826 = vsyncadd [#allocation3], 4294967168 }
  0xca   :  { %552 = vsyncpa [#allocation3], 1 }

</bundles_post_ra>
